<compile_context>
chip_gen: v7x
topology: tpu7x:2x2x1
jax: 0.10.0
libtpu: 0.0.40
codegen_flags: <defaults>
</compile_context>

<pallas_src>
import jax
import jax.numpy as jnp
from jax.experimental import pallas as pl
from jax.experimental.pallas import tpu as pltpu


def _make_kernel(H, W, C_in, C, NB):
    HW = H * W
    # Left/right halo of the flat staging buffer: >= W+1 (covers the dy = +/-1
    # row wrap of every tap) and rounded up to a 128-lane boundary so the
    # staging store and the middle zero-fill are lane-aligned.
    LPAD = -(-(W + 1) // 128) * 128
    PADW = LPAD + HW + LPAD
    c_pad = C - C_in

    def kernel(x_ref, w_ref, o_ref, xpad_ref, patches_ref):
        # x_ref:       (NB, C_in, HW)      flat NCHW activation (native C_in)
        # w_ref:       (C_out, 9*C)        conv weight, K index = (dy*3+dx)*C + ci
        # o_ref:       (NB, C_out, HW)     flat NCHW output
        # xpad_ref:    (NB, C, PADW)       zero-halo'd flat activation (scratch)
        # patches_ref: (9*C, NB*HW)        im2col matrix (scratch)
        dtype = x_ref.dtype
        zero = jnp.zeros((), dtype)

        # --- stage the activation (zero only halos + padded channel rows) ----
        xpad_ref[:, :, 0:LPAD] = jnp.zeros((NB, C, LPAD), dtype)
        xpad_ref[:, :, LPAD + HW:PADW] = jnp.zeros((NB, C, LPAD), dtype)
        if c_pad:
            # Scratch persists across grid steps: padded channel rows must be
            # zeroed every step or stale data leaks into the matmul.
            xpad_ref[:, C_in:C, LPAD:LPAD + HW] = jnp.zeros((NB, c_pad, HW), dtype)
        xpad_ref[:, 0:C_in, LPAD:LPAD + HW] = x_ref[...]

        # --- hoisted edge masks (built once per step, reused by all taps) ----
        px = jax.lax.broadcasted_iota(jnp.int32, (C, HW), 1) % W
        not_first_col = px >= 1        # valid lanes for dx == 0 taps
        not_last_col = px < W - 1      # valid lanes for dx == 2 taps

        # --- build the (9*C, NB*HW) im2col matrix -----------------------------
        for b in range(NB):
            for dy in range(3):
                for dx in range(3):
                    s = (dy - 1) * W + (dx - 1)                 # flat tap shift
                    tap = xpad_ref[b, :, LPAD + s:LPAD + s + HW]  # (C, HW)
                    if dx == 0:    # source column x-1 invalid at x == 0
                        tap = jnp.where(not_first_col, tap, zero)
                    elif dx == 2:  # source column x+1 invalid at x == W-1
                        tap = jnp.where(not_last_col, tap, zero)
                    t = dy * 3 + dx
                    patches_ref[t * C:(t + 1) * C, b * HW:(b + 1) * HW] = tap

        # --- single MXU push per grid step ------------------------------------
        # (C_out, 9*C) @ (9*C, NB*HW) -> (C_out, NB*HW), f32 accumulation.
        res = jnp.dot(w_ref[...], patches_ref[...],
                      preferred_element_type=jnp.float32)
        for b in range(NB):
            o_ref[b] = res[:, b * HW:(b + 1) * HW].astype(o_ref.dtype)

    return kernel


def overlap_patch_embed(x_nchw, weight_oihw):
    """Forward of OverlapPatchEmbed: Conv2d(k=3, s=1, p=1, bias=False), NCHW.

    x_nchw:      (N, C_in, H, W)
    weight_oihw: (C_out, C_in, 3, 3)
    returns:     (N, C_out, H, W)
    """
    N, C_in, H, W = x_nchw.shape
    C_out = weight_oihw.shape[0]
    HW = H * W

    # Channel count padded to a sublane multiple — applied in-kernel only.
    c_pad = (-C_in) % 8
    C = C_in + c_pad

    # Batch elements per grid step: largest divisor of N in {4, 3, 2}, else 1.
    NB = 1
    for cand in (4, 3, 2):
        if N % cand == 0:
            NB = cand
            break

    # Free reshape: NCHW is row-major, so (N,C,H,W) -> (N,C,H*W) is metadata.
    x_flat = x_nchw.reshape(N, C_in, HW)

    # Weight (C_out, C_in, 3, 3) -> (C_out, 9*C), K index = (dy*3+dx)*C + ci.
    # The weight is tiny, so padding it host-side is free.
    w = jnp.transpose(weight_oihw, (0, 2, 3, 1))            # (C_out, 3, 3, C_in)
    if c_pad:
        w = jnp.pad(w, ((0, 0), (0, 0), (0, 0), (0, c_pad)))
    w = w.reshape(C_out, 9 * C)

    LPAD = -(-(W + 1) // 128) * 128
    PADW = LPAD + HW + LPAD

    # Explicit VMEM budget: double-buffered I/O blocks + scratch, with headroom.
    itemsize = jnp.dtype(x_nchw.dtype).itemsize
    block_bytes = (NB * C_in * HW + C_out * 9 * C + NB * C_out * HW) * itemsize
    scratch_bytes = (NB * C * PADW + 9 * C * NB * HW) * itemsize
    vmem_limit = int(min(64 << 20,
                         max(32 << 20, 2 * block_bytes + scratch_bytes + (2 << 20))))

    out_flat = pl.pallas_call(
        _make_kernel(H, W, C_in, C, NB),
        out_shape=jax.ShapeDtypeStruct((N, C_out, HW), x_nchw.dtype),
        grid_spec=pltpu.PrefetchScalarGridSpec(
            num_scalar_prefetch=0,
            grid=(N // NB,),
            in_specs=[
                pl.BlockSpec((NB, C_in, HW), lambda n: (n, 0, 0)),
                pl.BlockSpec((C_out, 9 * C), lambda n: (0, 0)),
            ],
            out_specs=pl.BlockSpec((NB, C_out, HW), lambda n: (n, 0, 0)),
            scratch_shapes=[
                pltpu.VMEM((NB, C, PADW), x_nchw.dtype),       # staged flat x
                pltpu.VMEM((9 * C, NB * HW), x_nchw.dtype),    # im2col matrix
            ],
        ),
        compiler_params=pltpu.CompilerParams(
            dimension_semantics=("parallel",),
            vmem_limit_bytes=vmem_limit),
    )(x_flat, w)

    # Free reshape back to NCHW.
    return out_flat.reshape(N, C_out, H, W)


if __name__ == "__main__":
    # Small shapes consistent with the module: batch=2, in_c=4, H=W=16, embed_dim=48.
    N, C_in, H, W = 2, 4, 16, 16
    embed_dim = 48

    key = jax.random.PRNGKey(0)
    kx, kw = jax.random.split(key)
    x = jax.random.normal(kx, (N, C_in, H, W), dtype=jnp.float32)
    weight = jax.random.normal(kw, (embed_dim, C_in, 3, 3), dtype=jnp.float32) * 0.1

    out = jax.block_until_ready(overlap_patch_embed(x, weight))

    # Reference: XLA conv with identical semantics to nn.Conv2d(k=3,s=1,p=1,no bias).
    ref = jax.lax.conv_general_dilated(
        x, weight, window_strides=(1, 1), padding=((1, 1), (1, 1)),
        dimension_numbers=("NCHW", "OIHW", "NCHW"))
    assert out.shape == (N, embed_dim, H, W)
    assert jnp.allclose(out, ref, atol=1e-4, rtol=1e-4)

    print("KERNEL_OK")
</pallas_src>

<mosaic_0001>
module attributes {stable_mosaic.version = 11 : i64} {
  func.func @kernel(%arg0: i32, %arg1: memref<2x4x256xf32, #tpu.memory_space<vmem>>, %arg2: memref<48x72xf32, #tpu.memory_space<vmem>>, %arg3: memref<2x48x256xf32, #tpu.memory_space<vmem>>, %arg4: memref<2x8x512xf32, #tpu.memory_space<vmem>>, %arg5: memref<72x512xf32, #tpu.memory_space<vmem>>) attributes {dimension_semantics = [#tpu.dimension_semantics<parallel>], iteration_bounds = array<i64: 1>, scalar_prefetch = 0 : i64, scratch_operands = 2 : i64, tpu.core_type = #tpu.core_type<tc>, window_params = [{transform_indices = @transform_0, window_bounds = array<i64: 2, 4, 256>}, {pipeline_mode = #tpu.pipeline_mode<synchronous>, transform_indices = @transform_1, window_bounds = array<i64: 48, 72>}, {transform_indices = @transform_2, window_bounds = array<i64: 2, 48, 256>}]} {
    %cst = arith.constant 0.000000e+00 : f32
    %0 = vector.broadcast %cst : f32 to vector<2x8x128xf32>
    %c0 = arith.constant 0 : index
    %c0_0 = arith.constant 0 : index
    %c0_1 = arith.constant 0 : index
    %1 = vector.load %arg4[%c0, %c0_0, %c0_1] : memref<2x8x512xf32, #tpu.memory_space<vmem>>, vector<2x8x128xf32>
    tpu.vector_store %arg4[%c0, %c0_0, %c0_1], %0 {strides = array<i32>} : memref<2x8x512xf32, #tpu.memory_space<vmem>>, vector<2x8x128xf32>,
    %cst_2 = arith.constant 0.000000e+00 : f32
    %2 = vector.broadcast %cst_2 : f32 to vector<2x8x128xf32>
    %c0_3 = arith.constant 0 : index
    %c0_4 = arith.constant 0 : index
    %c384 = arith.constant 384 : index
    %3 = vector.load %arg4[%c0_3, %c0_4, %c384] : memref<2x8x512xf32, #tpu.memory_space<vmem>>, vector<2x8x128xf32>
    tpu.vector_store %arg4[%c0_3, %c0_4, %c384], %2 {strides = array<i32>} : memref<2x8x512xf32, #tpu.memory_space<vmem>>, vector<2x8x128xf32>,
    %cst_5 = arith.constant 0.000000e+00 : f32
    %4 = vector.broadcast %cst_5 : f32 to vector<2x4x256xf32>
    %c0_6 = arith.constant 0 : index
    %c4 = arith.constant 4 : index
    %c128 = arith.constant 128 : index
    %5 = vector.load %arg4[%c0_6, %c4, %c128] : memref<2x8x512xf32, #tpu.memory_space<vmem>>, vector<2x4x256xf32>
    tpu.vector_store %arg4[%c0_6, %c4, %c128], %4 {strides = array<i32>} : memref<2x8x512xf32, #tpu.memory_space<vmem>>, vector<2x4x256xf32>,
    %c0_7 = arith.constant 0 : index
    %c0_8 = arith.constant 0 : index
    %c0_9 = arith.constant 0 : index
    %6 = vector.load %arg1[%c0_7, %c0_8, %c0_9] : memref<2x4x256xf32, #tpu.memory_space<vmem>>, vector<2x4x256xf32>
    %c0_10 = arith.constant 0 : index
    %c0_11 = arith.constant 0 : index
    %c128_12 = arith.constant 128 : index
    %7 = vector.load %arg4[%c0_10, %c0_11, %c128_12] : memref<2x8x512xf32, #tpu.memory_space<vmem>>, vector<2x4x256xf32>
    tpu.vector_store %arg4[%c0_10, %c0_11, %c128_12], %6 {strides = array<i32>} : memref<2x8x512xf32, #tpu.memory_space<vmem>>, vector<2x4x256xf32>,
    %8 = tpu.iota {dimensions = array<i32: 1>} : vector<8x256xi32>
    %c16_i32 = arith.constant 16 : i32
    %c0_i32 = arith.constant 0 : i32
    %9 = arith.cmpi eq, %c16_i32, %c0_i32 : i32
    %c1_i32 = arith.constant 1 : i32
    %10 = arith.select %9, %c1_i32, %c16_i32 : i32
    %11 = vector.broadcast %10 : i32 to vector<8x256xi32>
    %12 = arith.remsi %8, %11 : vector<8x256xi32>
    %c0_i32_13 = arith.constant 0 : i32
    %13 = vector.broadcast %c0_i32_13 : i32 to vector<8x256xi32>
    %14 = arith.cmpi ne, %12, %13 : vector<8x256xi32>
    %c0_i32_14 = arith.constant 0 : i32
    %15 = vector.broadcast %c0_i32_14 : i32 to vector<8x256xi32>
    %16 = arith.cmpi slt, %12, %15 : vector<8x256xi32>
    %c0_i32_15 = arith.constant 0 : i32
    %17 = arith.cmpi slt, %10, %c0_i32_15 : i32
    %18 = vector.broadcast %17 : i1 to vector<8x256xi1>
    %19 = vector.broadcast %18 : vector<8x256xi1> to vector<8x256xi1>
    %20 = arith.xori %16, %19 : vector<8x256xi1>
    %21 = arith.andi %20, %14 : vector<8x256xi1>
    %22 = vector.broadcast %10 : i32 to vector<8x256xi32>
    %23 = arith.addi %12, %22 : vector<8x256xi32>
    %24 = arith.select %21, %23, %12 : vector<8x256xi1>, vector<8x256xi32>
    %c1_i32_16 = arith.constant 1 : i32
    %25 = vector.broadcast %c1_i32_16 : i32 to vector<8x256xi32>
    %26 = arith.cmpi sge, %24, %25 : vector<8x256xi32>
    %c15_i32 = arith.constant 15 : i32
    %27 = vector.broadcast %c15_i32 : i32 to vector<8x256xi32>
    %28 = arith.cmpi slt, %24, %27 : vector<8x256xi32>
    %c0_17 = arith.constant 0 : index
    %c0_18 = arith.constant 0 : index
    %c111 = arith.constant 111 : index
    %29 = vector.load %arg4[%c0_17, %c0_18, %c111] : memref<2x8x512xf32, #tpu.memory_space<vmem>>, vector<1x8x256xf32>
    %30 = vector.shape_cast %29 : vector<1x8x256xf32> to vector<8x256xf32>
    %cst_19 = arith.constant 0.000000e+00 : f32
    %31 = vector.broadcast %cst_19 : f32 to vector<8x256xf32>
    %32 = arith.select %26, %30, %31 : vector<8x256xi1>, vector<8x256xf32>
    %c0_20 = arith.constant 0 : index
    %c0_21 = arith.constant 0 : index
    %33 = vector.load %arg5[%c0_20, %c0_21] : memref<72x512xf32, #tpu.memory_space<vmem>>, vector<8x256xf32>
    tpu.vector_store %arg5[%c0_20, %c0_21], %32 {strides = array<i32>} : memref<72x512xf32, #tpu.memory_space<vmem>>, vector<8x256xf32>,
    %c0_22 = arith.constant 0 : index
    %c0_23 = arith.constant 0 : index
    %c112 = arith.constant 112 : index
    %34 = vector.load %arg4[%c0_22, %c0_23, %c112] : memref<2x8x512xf32, #tpu.memory_space<vmem>>, vector<1x8x256xf32>
    %35 = vector.shape_cast %34 : vector<1x8x256xf32> to vector<8x256xf32>
    %c8 = arith.constant 8 : index
    %c0_24 = arith.constant 0 : index
    %36 = vector.load %arg5[%c8, %c0_24] : memref<72x512xf32, #tpu.memory_space<vmem>>, vector<8x256xf32>
    tpu.vector_store %arg5[%c8, %c0_24], %35 {strides = array<i32>} : memref<72x512xf32, #tpu.memory_space<vmem>>, vector<8x256xf32>,
    %c0_25 = arith.constant 0 : index
    %c0_26 = arith.constant 0 : index
    %c113 = arith.constant 113 : index
    %37 = vector.load %arg4[%c0_25, %c0_26, %c113] : memref<2x8x512xf32, #tpu.memory_space<vmem>>, vector<1x8x256xf32>
    %38 = vector.shape_cast %37 : vector<1x8x256xf32> to vector<8x256xf32>
    %cst_27 = arith.constant 0.000000e+00 : f32
    %39 = vector.broadcast %cst_27 : f32 to vector<8x256xf32>
    %40 = arith.select %28, %38, %39 : vector<8x256xi1>, vector<8x256xf32>
    %c16 = arith.constant 16 : index
    %c0_28 = arith.constant 0 : index
    %41 = vector.load %arg5[%c16, %c0_28] : memref<72x512xf32, #tpu.memory_space<vmem>>, vector<8x256xf32>
    tpu.vector_store %arg5[%c16, %c0_28], %40 {strides = array<i32>} : memref<72x512xf32, #tpu.memory_space<vmem>>, vector<8x256xf32>,
    %c0_29 = arith.constant 0 : index
    %c0_30 = arith.constant 0 : index
    %c127 = arith.constant 127 : index
    %42 = vector.load %arg4[%c0_29, %c0_30, %c127] : memref<2x8x512xf32, #tpu.memory_space<vmem>>, vector<1x8x256xf32>
    %43 = vector.shape_cast %42 : vector<1x8x256xf32> to vector<8x256xf32>
    %cst_31 = arith.constant 0.000000e+00 : f32
    %44 = vector.broadcast %cst_31 : f32 to vector<8x256xf32>
    %45 = arith.select %26, %43, %44 : vector<8x256xi1>, vector<8x256xf32>
    %c24 = arith.constant 24 : index
    %c0_32 = arith.constant 0 : index
    %46 = vector.load %arg5[%c24, %c0_32] : memref<72x512xf32, #tpu.memory_space<vmem>>, vector<8x256xf32>
    tpu.vector_store %arg5[%c24, %c0_32], %45 {strides = array<i32>} : memref<72x512xf32, #tpu.memory_space<vmem>>, vector<8x256xf32>,
    %c0_33 = arith.constant 0 : index
    %c0_34 = arith.constant 0 : index
    %c128_35 = arith.constant 128 : index
    %47 = vector.load %arg4[%c0_33, %c0_34, %c128_35] : memref<2x8x512xf32, #tpu.memory_space<vmem>>, vector<1x8x256xf32>
    %48 = vector.shape_cast %47 : vector<1x8x256xf32> to vector<8x256xf32>
    %c32 = arith.constant 32 : index
    %c0_36 = arith.constant 0 : index
    %49 = vector.load %arg5[%c32, %c0_36] : memref<72x512xf32, #tpu.memory_space<vmem>>, vector<8x256xf32>
    tpu.vector_store %arg5[%c32, %c0_36], %48 {strides = array<i32>} : memref<72x512xf32, #tpu.memory_space<vmem>>, vector<8x256xf32>,
    %c0_37 = arith.constant 0 : index
    %c0_38 = arith.constant 0 : index
    %c129 = arith.constant 129 : index
    %50 = vector.load %arg4[%c0_37, %c0_38, %c129] : memref<2x8x512xf32, #tpu.memory_space<vmem>>, vector<1x8x256xf32>
    %51 = vector.shape_cast %50 : vector<1x8x256xf32> to vector<8x256xf32>
    %cst_39 = arith.constant 0.000000e+00 : f32
    %52 = vector.broadcast %cst_39 : f32 to vector<8x256xf32>
    %53 = arith.select %28, %51, %52 : vector<8x256xi1>, vector<8x256xf32>
    %c40 = arith.constant 40 : index
    %c0_40 = arith.constant 0 : index
    %54 = vector.load %arg5[%c40, %c0_40] : memref<72x512xf32, #tpu.memory_space<vmem>>, vector<8x256xf32>
    tpu.vector_store %arg5[%c40, %c0_40], %53 {strides = array<i32>} : memref<72x512xf32, #tpu.memory_space<vmem>>, vector<8x256xf32>,
    %c0_41 = arith.constant 0 : index
    %c0_42 = arith.constant 0 : index
    %c143 = arith.constant 143 : index
    %55 = vector.load %arg4[%c0_41, %c0_42, %c143] : memref<2x8x512xf32, #tpu.memory_space<vmem>>, vector<1x8x256xf32>
    %56 = vector.shape_cast %55 : vector<1x8x256xf32> to vector<8x256xf32>
    %cst_43 = arith.constant 0.000000e+00 : f32
    %57 = vector.broadcast %cst_43 : f32 to vector<8x256xf32>
    %58 = arith.select %26, %56, %57 : vector<8x256xi1>, vector<8x256xf32>
    %c48 = arith.constant 48 : index
    %c0_44 = arith.constant 0 : index
    %59 = vector.load %arg5[%c48, %c0_44] : memref<72x512xf32, #tpu.memory_space<vmem>>, vector<8x256xf32>
    tpu.vector_store %arg5[%c48, %c0_44], %58 {strides = array<i32>} : memref<72x512xf32, #tpu.memory_space<vmem>>, vector<8x256xf32>,
    %c0_45 = arith.constant 0 : index
    %c0_46 = arith.constant 0 : index
    %c144 = arith.constant 144 : index
    %60 = vector.load %arg4[%c0_45, %c0_46, %c144] : memref<2x8x512xf32, #tpu.memory_space<vmem>>, vector<1x8x256xf32>
    %61 = vector.shape_cast %60 : vector<1x8x256xf32> to vector<8x256xf32>
    %c56 = arith.constant 56 : index
    %c0_47 = arith.constant 0 : index
    %62 = vector.load %arg5[%c56, %c0_47] : memref<72x512xf32, #tpu.memory_space<vmem>>, vector<8x256xf32>
    tpu.vector_store %arg5[%c56, %c0_47], %61 {strides = array<i32>} : memref<72x512xf32, #tpu.memory_space<vmem>>, vector<8x256xf32>,
    %c0_48 = arith.constant 0 : index
    %c0_49 = arith.constant 0 : index
    %c145 = arith.constant 145 : index
    %63 = vector.load %arg4[%c0_48, %c0_49, %c145] : memref<2x8x512xf32, #tpu.memory_space<vmem>>, vector<1x8x256xf32>
    %64 = vector.shape_cast %63 : vector<1x8x256xf32> to vector<8x256xf32>
    %cst_50 = arith.constant 0.000000e+00 : f32
    %65 = vector.broadcast %cst_50 : f32 to vector<8x256xf32>
    %66 = arith.select %28, %64, %65 : vector<8x256xi1>, vector<8x256xf32>
    %c64 = arith.constant 64 : index
    %c0_51 = arith.constant 0 : index
    %67 = vector.load %arg5[%c64, %c0_51] : memref<72x512xf32, #tpu.memory_space<vmem>>, vector<8x256xf32>
    tpu.vector_store %arg5[%c64, %c0_51], %66 {strides = array<i32>} : memref<72x512xf32, #tpu.memory_space<vmem>>, vector<8x256xf32>,
    %c1 = arith.constant 1 : index
    %c0_52 = arith.constant 0 : index
    %c111_53 = arith.constant 111 : index
    %68 = vector.load %arg4[%c1, %c0_52, %c111_53] : memref<2x8x512xf32, #tpu.memory_space<vmem>>, vector<1x8x256xf32>
    %69 = vector.shape_cast %68 : vector<1x8x256xf32> to vector<8x256xf32>
    %cst_54 = arith.constant 0.000000e+00 : f32
    %70 = vector.broadcast %cst_54 : f32 to vector<8x256xf32>
    %71 = arith.select %26, %69, %70 : vector<8x256xi1>, vector<8x256xf32>
    %c0_55 = arith.constant 0 : index
    %c256 = arith.constant 256 : index
    %72 = vector.load %arg5[%c0_55, %c256] : memref<72x512xf32, #tpu.memory_space<vmem>>, vector<8x256xf32>
    tpu.vector_store %arg5[%c0_55, %c256], %71 {strides = array<i32>} : memref<72x512xf32, #tpu.memory_space<vmem>>, vector<8x256xf32>,
    %c1_56 = arith.constant 1 : index
    %c0_57 = arith.constant 0 : index
    %c112_58 = arith.constant 112 : index
    %73 = vector.load %arg4[%c1_56, %c0_57, %c112_58] : memref<2x8x512xf32, #tpu.memory_space<vmem>>, vector<1x8x256xf32>
    %74 = vector.shape_cast %73 : vector<1x8x256xf32> to vector<8x256xf32>
    %c8_59 = arith.constant 8 : index
    %c256_60 = arith.constant 256 : index
    %75 = vector.load %arg5[%c8_59, %c256_60] : memref<72x512xf32, #tpu.memory_space<vmem>>, vector<8x256xf32>
    tpu.vector_store %arg5[%c8_59, %c256_60], %74 {strides = array<i32>} : memref<72x512xf32, #tpu.memory_space<vmem>>, vector<8x256xf32>,
    %c1_61 = arith.constant 1 : index
    %c0_62 = arith.constant 0 : index
    %c113_63 = arith.constant 113 : index
    %76 = vector.load %arg4[%c1_61, %c0_62, %c113_63] : memref<2x8x512xf32, #tpu.memory_space<vmem>>, vector<1x8x256xf32>
    %77 = vector.shape_cast %76 : vector<1x8x256xf32> to vector<8x256xf32>
    %cst_64 = arith.constant 0.000000e+00 : f32
    %78 = vector.broadcast %cst_64 : f32 to vector<8x256xf32>
    %79 = arith.select %28, %77, %78 : vector<8x256xi1>, vector<8x256xf32>
    %c16_65 = arith.constant 16 : index
    %c256_66 = arith.constant 256 : index
    %80 = vector.load %arg5[%c16_65, %c256_66] : memref<72x512xf32, #tpu.memory_space<vmem>>, vector<8x256xf32>
    tpu.vector_store %arg5[%c16_65, %c256_66], %79 {strides = array<i32>} : memref<72x512xf32, #tpu.memory_space<vmem>>, vector<8x256xf32>,
    %c1_67 = arith.constant 1 : index
    %c0_68 = arith.constant 0 : index
    %c127_69 = arith.constant 127 : index
    %81 = vector.load %arg4[%c1_67, %c0_68, %c127_69] : memref<2x8x512xf32, #tpu.memory_space<vmem>>, vector<1x8x256xf32>
    %82 = vector.shape_cast %81 : vector<1x8x256xf32> to vector<8x256xf32>
    %cst_70 = arith.constant 0.000000e+00 : f32
    %83 = vector.broadcast %cst_70 : f32 to vector<8x256xf32>
    %84 = arith.select %26, %82, %83 : vector<8x256xi1>, vector<8x256xf32>
    %c24_71 = arith.constant 24 : index
    %c256_72 = arith.constant 256 : index
    %85 = vector.load %arg5[%c24_71, %c256_72] : memref<72x512xf32, #tpu.memory_space<vmem>>, vector<8x256xf32>
    tpu.vector_store %arg5[%c24_71, %c256_72], %84 {strides = array<i32>} : memref<72x512xf32, #tpu.memory_space<vmem>>, vector<8x256xf32>,
    %c1_73 = arith.constant 1 : index
    %c0_74 = arith.constant 0 : index
    %c128_75 = arith.constant 128 : index
    %86 = vector.load %arg4[%c1_73, %c0_74, %c128_75] : memref<2x8x512xf32, #tpu.memory_space<vmem>>, vector<1x8x256xf32>
    %87 = vector.shape_cast %86 : vector<1x8x256xf32> to vector<8x256xf32>
    %c32_76 = arith.constant 32 : index
    %c256_77 = arith.constant 256 : index
    %88 = vector.load %arg5[%c32_76, %c256_77] : memref<72x512xf32, #tpu.memory_space<vmem>>, vector<8x256xf32>
    tpu.vector_store %arg5[%c32_76, %c256_77], %87 {strides = array<i32>} : memref<72x512xf32, #tpu.memory_space<vmem>>, vector<8x256xf32>,
    %c1_78 = arith.constant 1 : index
    %c0_79 = arith.constant 0 : index
    %c129_80 = arith.constant 129 : index
    %89 = vector.load %arg4[%c1_78, %c0_79, %c129_80] : memref<2x8x512xf32, #tpu.memory_space<vmem>>, vector<1x8x256xf32>
    %90 = vector.shape_cast %89 : vector<1x8x256xf32> to vector<8x256xf32>
    %cst_81 = arith.constant 0.000000e+00 : f32
    %91 = vector.broadcast %cst_81 : f32 to vector<8x256xf32>
    %92 = arith.select %28, %90, %91 : vector<8x256xi1>, vector<8x256xf32>
    %c40_82 = arith.constant 40 : index
    %c256_83 = arith.constant 256 : index
    %93 = vector.load %arg5[%c40_82, %c256_83] : memref<72x512xf32, #tpu.memory_space<vmem>>, vector<8x256xf32>
    tpu.vector_store %arg5[%c40_82, %c256_83], %92 {strides = array<i32>} : memref<72x512xf32, #tpu.memory_space<vmem>>, vector<8x256xf32>,
    %c1_84 = arith.constant 1 : index
    %c0_85 = arith.constant 0 : index
    %c143_86 = arith.constant 143 : index
    %94 = vector.load %arg4[%c1_84, %c0_85, %c143_86] : memref<2x8x512xf32, #tpu.memory_space<vmem>>, vector<1x8x256xf32>
    %95 = vector.shape_cast %94 : vector<1x8x256xf32> to vector<8x256xf32>
    %cst_87 = arith.constant 0.000000e+00 : f32
    %96 = vector.broadcast %cst_87 : f32 to vector<8x256xf32>
    %97 = arith.select %26, %95, %96 : vector<8x256xi1>, vector<8x256xf32>
    %c48_88 = arith.constant 48 : index
    %c256_89 = arith.constant 256 : index
    %98 = vector.load %arg5[%c48_88, %c256_89] : memref<72x512xf32, #tpu.memory_space<vmem>>, vector<8x256xf32>
    tpu.vector_store %arg5[%c48_88, %c256_89], %97 {strides = array<i32>} : memref<72x512xf32, #tpu.memory_space<vmem>>, vector<8x256xf32>,
    %c1_90 = arith.constant 1 : index
    %c0_91 = arith.constant 0 : index
    %c144_92 = arith.constant 144 : index
    %99 = vector.load %arg4[%c1_90, %c0_91, %c144_92] : memref<2x8x512xf32, #tpu.memory_space<vmem>>, vector<1x8x256xf32>
    %100 = vector.shape_cast %99 : vector<1x8x256xf32> to vector<8x256xf32>
    %c56_93 = arith.constant 56 : index
    %c256_94 = arith.constant 256 : index
    %101 = vector.load %arg5[%c56_93, %c256_94] : memref<72x512xf32, #tpu.memory_space<vmem>>, vector<8x256xf32>
    tpu.vector_store %arg5[%c56_93, %c256_94], %100 {strides = array<i32>} : memref<72x512xf32, #tpu.memory_space<vmem>>, vector<8x256xf32>,
    %c1_95 = arith.constant 1 : index
    %c0_96 = arith.constant 0 : index
    %c145_97 = arith.constant 145 : index
    %102 = vector.load %arg4[%c1_95, %c0_96, %c145_97] : memref<2x8x512xf32, #tpu.memory_space<vmem>>, vector<1x8x256xf32>
    %103 = vector.shape_cast %102 : vector<1x8x256xf32> to vector<8x256xf32>
    %cst_98 = arith.constant 0.000000e+00 : f32
    %104 = vector.broadcast %cst_98 : f32 to vector<8x256xf32>
    %105 = arith.select %28, %103, %104 : vector<8x256xi1>, vector<8x256xf32>
    %c64_99 = arith.constant 64 : index
    %c256_100 = arith.constant 256 : index
    %106 = vector.load %arg5[%c64_99, %c256_100] : memref<72x512xf32, #tpu.memory_space<vmem>>, vector<8x256xf32>
    tpu.vector_store %arg5[%c64_99, %c256_100], %105 {strides = array<i32>} : memref<72x512xf32, #tpu.memory_space<vmem>>, vector<8x256xf32>,
    %c0_101 = arith.constant 0 : index
    %c0_102 = arith.constant 0 : index
    %107 = vector.load %arg2[%c0_101, %c0_102] : memref<48x72xf32, #tpu.memory_space<vmem>>, vector<48x72xf32>
    %c0_103 = arith.constant 0 : index
    %c0_104 = arith.constant 0 : index
    %108 = vector.load %arg5[%c0_103, %c0_104] : memref<72x512xf32, #tpu.memory_space<vmem>>, vector<72x512xf32>
    %cst_105 = arith.constant dense<0.000000e+00> : vector<48x512xf32>
    %109 = tpu.matmul %107, %108, %cst_105 {dimension_numbers = #tpu.dot_dimension_numbers<[1], [0], [0], [1], [0, 0, 1, 1], [], []>} : vector<48x72xf32>, vector<72x512xf32>, vector<48x512xf32> -> vector<48x512xf32>
    %110 = vector.extract_strided_slice %109 {offsets = [0, 0], sizes = [48, 256], strides = [1, 1]} : vector<48x512xf32> to vector<48x256xf32>
    %c0_106 = arith.constant 0 : index
    %c0_107 = arith.constant 0 : index
    %c0_108 = arith.constant 0 : index
    %111 = vector.load %arg3[%c0_106, %c0_107, %c0_108] : memref<2x48x256xf32, #tpu.memory_space<vmem>>, vector<1x48x256xf32>
    %112 = vector.shape_cast %111 : vector<1x48x256xf32> to vector<48x256xf32>
    %113 = vector.shape_cast %110 : vector<48x256xf32> to vector<1x48x256xf32>
    tpu.vector_store %arg3[%c0_106, %c0_107, %c0_108], %113 {strides = array<i32>} : memref<2x48x256xf32, #tpu.memory_space<vmem>>, vector<1x48x256xf32>,
    %114 = vector.extract_strided_slice %109 {offsets = [0, 256], sizes = [48, 256], strides = [1, 1]} : vector<48x512xf32> to vector<48x256xf32>
    %c1_109 = arith.constant 1 : index
    %c0_110 = arith.constant 0 : index
    %c0_111 = arith.constant 0 : index
    %115 = vector.load %arg3[%c1_109, %c0_110, %c0_111] : memref<2x48x256xf32, #tpu.memory_space<vmem>>, vector<1x48x256xf32>
    %116 = vector.shape_cast %115 : vector<1x48x256xf32> to vector<48x256xf32>
    %117 = vector.shape_cast %114 : vector<48x256xf32> to vector<1x48x256xf32>
    tpu.vector_store %arg3[%c1_109, %c0_110, %c0_111], %117 {strides = array<i32>} : memref<2x48x256xf32, #tpu.memory_space<vmem>>, vector<1x48x256xf32>,
    return
  }
  func.func @transform_0(%arg0: i32) -> (i32, i32, i32) {
    %c0_i32 = arith.constant 0 : i32
    %c0_i32_0 = arith.constant 0 : i32
    %c0_i32_1 = arith.constant 0 : i32
    return %arg0, %c0_i32, %c0_i32_0 : i32, i32, i32
  }
  func.func @transform_1(%arg0: i32) -> (i32, i32) {
    %c0_i32 = arith.constant 0 : i32
    %c0_i32_0 = arith.constant 0 : i32
    %c0_i32_1 = arith.constant 0 : i32
    return %c0_i32, %c0_i32_0 : i32, i32
  }
  func.func @transform_2(%arg0: i32) -> (i32, i32, i32) {
    %c0_i32 = arith.constant 0 : i32
    %c0_i32_0 = arith.constant 0 : i32
    %c0_i32_1 = arith.constant 0 : i32
    return %arg0, %c0_i32, %c0_i32_0 : i32, i32, i32
  }
}

</mosaic_0001>

<bundles_post_ra>
// kernel: tpu_custom_call.1
= control target key start
LH: loop header
LB: loop body
LE: loop exit
PB: predicated region body
PF: predicated region fallthrough
CT: control target
= control target key end

     0   :  { %7 = vsyncpa [#allocation5], 0  ;;  %s1254_s0 = inlined_call_operand.hbm [shape: f32[2,4,256], index: 0, kind: input, shape index: {}]   ;;  %s1255_s1 = inlined_call_operand.hbm [shape: f32[48,72], index: 1, kind: input, shape index: {}]   ;;  %s1256_s2 = inlined_call_operand.hbm [shape: f32[2,48,256], index: 2, kind: output, shape index: {}]  }
   0x1   :  { %8 = vsyncpa [#allocation8], 0 }
   0x2   :  { %9 = vsyncpa [#allocation6], 0  ;;  %s1005_s9 = smov [#allocation4]   ;;  %s933_s13 = scalar_lea.hbm %s1254_s0, 256 }
   0x3   :  { %s15_s10 = sshll.u32 %s1005_s9, 4  ;;  %p934_p0 = scmp.ne.s32.totalorder %s1254_s0, %s933_s13  ;;  %s16_s10 = int_to_ptr.vmem [resolvable:$true] %s15_s10 }
   0x4   :  { %p937_p1 = scmp.lt.u32.totalorder %s933_s13, %s1254_s0 }
   0x6   :  { %p939_p2 = pnand %p937_p1, %p934_p0 }
   0x8   :  { %942 = shalt.err (!%p939_p2)
}
   0x9   :  { %s943_s18 = scalar_lea.vmem %s16_s10, 256  ;;  %p948_p4 = scmp.lt.s32.totalorder %s16_s10, %s16_s10 }
   0xa   :  { %p944_p3 = scmp.ne.s32.totalorder %s16_s10, %s943_s18  ;;  %p949_p5 = scmp.lt.s32.totalorder %s943_s18, %s943_s18 }
   0xc   :  { %p950_p6 = por %p949_p5, %p948_p4 }
   0xe   :  { %p951_p7 = pnand %p950_p6, %p944_p3 }
  0x10   :  { %954 = shalt.err (!%p951_p7)
}
  0x11   :  { %s1006_s19 = smov 128   ;;  %s1007_s20 = smov 8  }
  0x12   :  { %21 = dma.hbm_to_vmem [thread:$0]  %s1254_s0, 256, %s16_s10, [#allocation5], %s1006_s19, %s1006_s19, %s1007_s20  }
  0x13   :  { %s1008_s23 = smov [#allocation7]   ;;  %s955_s27 = scalar_lea.hbm %s1255_s1, 768 }
  0x14   :  { %s27_s24 = sshll.u32 %s1008_s23, 4  ;;  %p956_p8 = scmp.ne.s32.totalorder %s1255_s1, %s955_s27  ;;  %s28_s24 = int_to_ptr.vmem [resolvable:$true] %s27_s24 }
  0x15   :  { %p959_p9 = scmp.lt.u32.totalorder %s955_s27, %s1255_s1 }
  0x17   :  { %p961_p10 = pnand %p959_p9, %p956_p8 }
  0x19   :  { %964 = shalt.err (!%p961_p10)
}
  0x1a   :  { %s965_s4 = scalar_lea.vmem %s28_s24, 768  ;;  %p970_p12 = scmp.lt.s32.totalorder %s28_s24, %s28_s24 }
  0x1b   :  { %p966_p11 = scmp.ne.s32.totalorder %s28_s24, %s965_s4  ;;  %p971_p13 = scmp.lt.s32.totalorder %s965_s4, %s965_s4 }
  0x1d   :  { %p972_p0 = por %p971_p13, %p970_p12 }
  0x1f   :  { %p973_p1 = pnand %p972_p0, %p966_p11 }
  0x21   :  { %976 = shalt.err (!%p973_p1)
}
  0x22   :  { %33 = dma.hbm_to_vmem [thread:$0]  %s1255_s1, 768, %s28_s24, [#allocation8], %s1006_s19, %s1006_s19, %s1007_s20  }
  0x23   :  { %999 = dma.done.wait [#allocation5], 256  }
  0x24   :  { %1000 = vsyncadd [#allocation5], 4294967040 }
  0x25   :  { %1001 = dma.done.wait [#allocation8], 768  }
  0x26   :  { %1002 = vsyncadd [#allocation8], 4294966528  ;;  %v1009_v0 = vmov 0.0   ;;  %s1010_s6 = smov 16   ;;  %s1011_s1 = smov 17   ;;  %v49_v1 = vld [vmem:[#allocation4 + $0x8] sm:$0xff]  ;;  %v60_v14 = vlaneseq }
  0x27   :  { %44 = vst [vmem:[#allocation2 + $0x8] sm:$0xf0] %v1009_v0  ;;  %45 = vst [vmem:[#allocation2 + $0x10] sm:$0xf0] %v1009_v0  ;;  %545 = vmatprep.mubr.f32.mxu0 %v1009_v0  ;;  %646 = vmatprep.mubr.f32.mxu1 %v1009_v0  ;;  %v48_v2 = vld [vmem:[#allocation4] sm:$0xff]  ;;  %v53_v3 = vcombine.high %v49_v1, %v49_v1  ;;  %s1012_s7 = smov 1  }
  0x28   :  { %46 = vst [vmem:[#allocation2 + $0x28] sm:$0xf0] %v1009_v0  ;;  %47 = vst [vmem:[#allocation2 + $0x30] sm:$0xf0] %v1009_v0  ;;  %832 = vrot.lane.b32.xlu1 %v1009_v0, %s1010_s6  ;;  %827 = vrot.lane.b32.xlu0 %v1009_v0, %s1011_s1  ;;  %v52_v4 = vcombine.high %v48_v2, %v48_v2  ;;  %s1013_s8 = smov 15   ;;  %s1014_s9 = smov 127  }
  0x29   :  { %58 = vst [vmem:[#allocation2 + $0x28] sm:$0xf] %v49_v1  ;;  %56 = vst [vmem:[#allocation2 + $0x8] sm:$0xf] %v48_v2  ;;  %s1015_s10 = smov 113   ;;  %s1016_s11 = smov 112  }
  0x2a   :  { %59 = vst [vmem:[#allocation2 + $0x30] sm:$0xf] %v53_v3  ;;  %57 = vst [vmem:[#allocation2 + $0x10] sm:$0xf] %v52_v4  ;;  %s1017_s12 = smov 111   ;;  %v1097_v15 = vand.u32 127, %v60_v14 }
  0x2b   :  { %vm164_vm0 = vcmask 7168   ;;  %vm103_vm1 = vcmask 138240   ;;  %vm124_vm2 = vcmask 130048   ;;  %vm143_vm4 = vcmask 121856   ;;  %v422_v43 = vld [vmem:[#allocation7 + $0x10] sm:$0xff]  ;;  %s1019_s13 = smov [#allocation9]  }
  0x2c   :  { %v62_v18 = vadd.s32 128, %v1097_v15  ;;  %v67_v20 = vand.u32 15, %v1097_v15  ;;  %vm1018_vm7 = vmmov 1   ;;  %vm189_vm13 = vcmask 1039360   ;;  %s713_s14 = sshll.u32 %s1019_s13, 4  ;;  %s714_s14 = int_to_ptr.vmem [resolvable:$true] %s713_s14 }
  0x2d   :  { %vm210_vm15 = vcmask 924672   ;;  %s977_s15 = scalar_lea.vmem %s714_s14, 3072  ;;  %p982_p3 = scmp.lt.s32.totalorder %s714_s14, %s714_s14 }
  0x2e   :  { %v74_v19 = vand.u32 15, %v62_v18  ;;  %vm1107_vm5 = vcmp.ge.s32.totalorder %v67_v20, 1  ;;  %vm1160_vm11 = vcmp.lt.s32.totalorder %v67_v20, 15  ;;  %p978_p2 = scmp.ne.s32.totalorder %s714_s14, %s977_s15  ;;  %p983_p4 = scmp.lt.s32.totalorder %s977_s15, %s977_s15 }
  0x2f   :  { %vm1133_vm9 = vmpackc.low %vm1018_vm7, %vm1107_vm5 }
  0x30   :  { %v1069_v5 = vld [vmem:[#allocation2 + $0x28] sm:$0xff]  ;;  %vm1101_vm3 = vcmp.ge.s32.totalorder %v74_v19, 1  ;;  %vm1115_vm6 = vcmp.lt.s32.totalorder %v74_v19, 15  ;;  %vm772_vm12 = vmpackc.low %vm1107_vm5, %vm1160_vm11  ;;  %p984_p5 = por %p983_p4, %p982_p3 }
  0x31   :  { %v1071_v6 = vld [vmem:[#allocation2 + $0x8] sm:$0xff]  ;;  %v1073_v7 = vld [vmem:[#allocation2 + $0x30] sm:$0xff]  ;;  %vm1123_vm8 = vmpackc.low %vm1018_vm7, %vm1101_vm3 }
  0x32   :  { %v1075_v8 = vld [vmem:[#allocation2 + $0x10] sm:$0xff]  ;;  %v846_v9 = vpack.i.bf16 %v1073_v7, %v1069_v5  ;;  %v891_v11 = vpack.i.bf16 %v1009_v0, %v1073_v7  ;;  %v896_v13 = vpack.i.bf16 %v1069_v5, %v1071_v6  ;;  %vm769_vm10 = vmpackc.low %vm1101_vm3, %vm1115_vm6  ;;  %vm462_vm3 = vcmask 588800   ;;  %p985_p6 = pnand %p984_p5, %p978_p2 }
  0x33   :  { %v836_v10 = vpack.i.bf16 %v1075_v8, %v1071_v6  ;;  %v886_v12 = vpack.i.bf16 %v1009_v0, %v1075_v8  ;;  %vm775_vm14 = vmpackc.low %vm1115_vm6, %vm1018_vm7 }
  0x34   :  { %847 = vrot.lane.b32.xlu1 %v846_v9, %s1011_s1 }
  0x35   :  { %837 = vrot.lane.b32.xlu0 %v836_v10, %s1011_s1 }
  0x38   :  { %852 = vrot.lane.b32.xlu1 %v846_v9, %s1010_s6 }
  0x39   :  { %842 = vrot.lane.b32.xlu0 %v836_v10, %s1010_s6 }
  0x3c   :  { %862 = vrot.lane.b32.xlu1 %v836_v10, %s1012_s7 }
  0x3d   :  { %857 = vrot.lane.b32.xlu0 %v836_v10, %s1013_s8 }
  0x40   :  { %877 = vrot.lane.b32.xlu1 %v846_v9, %s1012_s7 }
  0x41   :  { %867 = vrot.lane.b32.xlu0 %v846_v9, %s1013_s8 }
  0x44   :  { %882 = vrot.lane.b32.xlu1 %v1009_v0, %s1012_s7 }
  0x45   :  { %872 = vrot.lane.b32.xlu0 %v1009_v0, %s1013_s8 }
  0x48   :  { %892 = vrot.lane.b32.xlu1 %v891_v11, %s1014_s9 }
  0x49   :  { %887 = vrot.lane.b32.xlu0 %v886_v12, %s1014_s9 }
  0x4c   :  { %902 = vrot.lane.b32.xlu1 %v886_v12, %s1015_s10 }
  0x4d   :  { %897 = vrot.lane.b32.xlu0 %v896_v13, %s1014_s9 }
  0x50   :  { %912 = vrot.lane.b32.xlu1 %v891_v11, %s1015_s10 }
  0x51   :  { %907 = vrot.lane.b32.xlu0 %v886_v12, %s1016_s11 }
  0x54   :  { %922 = vrot.lane.b32.xlu1 %v896_v13, %s1015_s10 }
  0x55   :  { %917 = vrot.lane.b32.xlu0 %v891_v11, %s1016_s11 }
  0x58   :  { %246 = vrot.lane.b32.xlu1 %v1075_v8, %s1017_s12 }
  0x59   :  { %927 = vrot.lane.b32.xlu0 %v896_v13, %s1016_s11 }
  0x5c   :  { %408 = vrot.lane.b32.xlu1 %v1073_v7, %s1017_s12 }
  0x5d   :  { %248 = vrot.lane.b32.xlu0 %v1009_v0, %s1017_s12 }
  0x60   :  { %244 = vrot.lane.b32.xlu1 %v1071_v6, %s1017_s12 }
  0x61   :  { %410 = vrot.lane.b32.xlu0 %v1009_v0, %s1017_s12 }
  0x65   :  { %406 = vrot.lane.b32.xlu0 %v1069_v5, %s1017_s12 }
  0x9a   :  { %v833_v16 = vpop.permute.xlu1 %832  ;;  %v828_v17 = vpop.permute.xlu0 %827 }
  0x9b   :  { %v835_v28 = vunpack.i.h.bf16 %v833_v16  ;;  %v834_v30 = vunpack.i.l.bf16 %v833_v16  ;;  %v830_v31 = vunpack.i.h.bf16 %v828_v17  ;;  %v829_v32 = vunpack.i.l.bf16 %v828_v17  ;;  %v424_v16 = vld [vmem:[#allocation7 + $0x20] sm:$0xff] }
  0xa6   :  { %v848_v21 = vpop.permute.xlu1 %847 }
  0xa7   :  { %v838_v22 = vpop.permute.xlu0 %837  ;;  %v850_v23 = vunpack.i.h.bf16 %v848_v21  ;;  %v849_v24 = vunpack.i.l.bf16 %v848_v21 }
  0xa8   :  { %v840_v25 = vunpack.i.h.bf16 %v838_v22  ;;  %v839_v26 = vunpack.i.l.bf16 %v838_v22 }
  0xa9   :  { %v273_v35 = vsel %vm103_vm1, %v849_v24, %v850_v23  ;;  %v272_v42 = vsel %vm103_vm1, %v830_v31, %v849_v24 }
  0xaa   :  { %v853_v33 = vpop.permute.xlu1 %852  ;;  %v105_v40 = vsel %vm103_vm1, %v839_v26, %v840_v25  ;;  %v104_v41 = vsel %vm103_vm1, %v829_v32, %v839_v26  ;;  %vm231_vm1 = vcmask 916480  }
  0xab   :  { %v843_v34 = vpop.permute.xlu0 %842  ;;  %v855_v36 = vunpack.i.h.bf16 %v853_v33  ;;  %v854_v37 = vunpack.i.l.bf16 %v853_v33 }
  0xac   :  { %v845_v38 = vunpack.i.h.bf16 %v843_v34  ;;  %v844_v39 = vunpack.i.l.bf16 %v843_v34 }
  0xad   :  { %v293_v46 = vsel %vm124_vm2, %v854_v37, %v855_v36  ;;  %v292_v48 = vsel %vm124_vm2, %v835_v28, %v854_v37 }
  0xae   :  { %v126_v44 = vsel %vm124_vm2, %v844_v39, %v845_v38  ;;  %v125_v47 = vsel %vm124_vm2, %v834_v30, %v844_v39  ;;  %v863_v49 = vpop.permute.xlu1 %862  ;;  %v786_v52 = vpack.c.bf16 %v293_v46, %v273_v35  ;;  %v789_v55 = vpack.c.bf16 %v292_v48, %v272_v42 }
  0xaf   :  { %v858_v50 = vpop.permute.xlu0 %857  ;;  %v762_v51 = vpack.c.bf16 %v126_v44, %v105_v40  ;;  %v765_v53 = vpack.c.bf16 %v125_v47, %v104_v41  ;;  %v865_v56 = vunpack.i.h.bf16 %v863_v49  ;;  %v864_v57 = vunpack.i.l.bf16 %v863_v49 }
  0xb0   :  { %v860_v58 = vunpack.i.h.bf16 %v858_v50  ;;  %v859_v59 = vunpack.i.l.bf16 %v858_v50  ;;  %788 = vmatprep.subr.msk.bf16.mxu1 %vm1123_vm8, %v786_v52  ;;  %vm250_vm2 = vcmask 908288  }
  0xb1   :  { %764 = vmatprep.subr.msk.bf16.mxu0 %vm1123_vm8, %v762_v51  ;;  %v166_v60 = vsel %vm164_vm0, %v864_v57, %v865_v56  ;;  %791 = vmatpush1.bf16.msk.msra.mxu1 %vm1133_vm9, %v789_v55 }
  0xb2   :  { %v145_v61 = vsel %vm143_vm4, %v859_v59, %v860_v58  ;;  %767 = vmatpush1.bf16.msk.msra.mxu0 %vm1133_vm9, %v765_v53  ;;  %v878_v63 = vpop.permute.xlu1 %877 }
  0xb3   :  { %v768_v62 = vpack.c.bf16 %v166_v60, %v145_v61  ;;  %v868_v1 = vpop.permute.xlu0 %867  ;;  %v880_v2 = vunpack.i.h.bf16 %v878_v63  ;;  %v879_v3 = vunpack.i.l.bf16 %v878_v63 }
  0xb4   :  { %v870_v4 = vunpack.i.h.bf16 %v868_v1  ;;  %v869_v9 = vunpack.i.l.bf16 %v868_v1 }
  0xb5   :  { %770 = vmatprep.subr.msk.bf16.mxu0 %vm769_vm10, %v768_v62  ;;  %v331_v10 = vsel %vm164_vm0, %v879_v3, %v880_v2 }
  0xb6   :  { %v311_v11 = vsel %vm143_vm4, %v869_v9, %v870_v4  ;;  %v883_v13 = vpop.permute.xlu1 %882 }
  0xb7   :  { %v792_v12 = vpack.c.bf16 %v331_v10, %v311_v11  ;;  %v873_v14 = vpop.permute.xlu0 %872  ;;  %v885_v17 = vunpack.i.h.bf16 %v883_v13  ;;  %v884_v18 = vunpack.i.l.bf16 %v883_v13 }
  0xb8   :  { %v875_v19 = vunpack.i.h.bf16 %v873_v14  ;;  %v874_v21 = vunpack.i.l.bf16 %v873_v14 }
  0xb9   :  { %794 = vmatprep.subr.msk.bf16.mxu1 %vm769_vm10, %v792_v12  ;;  %v165_v22 = vsel %vm164_vm0, %v884_v18, %v864_v57  ;;  %v330_v23 = vsel %vm164_vm0, %v885_v17, %v879_v3  ;;  %vm778_vm0 = vmpackc.low %vm1160_vm11, %vm1018_vm7 }
  0xba   :  { %v144_v15 = vsel %vm143_vm4, %v874_v21, %v859_v59  ;;  %v310_v20 = vsel %vm143_vm4, %v875_v19, %v869_v9  ;;  %v893_v26 = vpop.permute.xlu1 %892  ;;  %v420_v21 = vld [vmem:[#allocation7] sm:$0xff] }
  0xbb   :  { %v771_v24 = vpack.c.bf16 %v165_v22, %v144_v15  ;;  %v795_v25 = vpack.c.bf16 %v330_v23, %v310_v20  ;;  %v888_v27 = vpop.permute.xlu0 %887  ;;  %v895_v28 = vunpack.i.h.bf16 %v893_v26  ;;  %v894_v30 = vunpack.i.l.bf16 %v893_v26  ;;  %v421_v15 = vld [vmem:[#allocation7 + $0x8] sm:$0xff] }
  0xbc   :  { %v890_v31 = vunpack.i.h.bf16 %v888_v27  ;;  %v889_v32 = vunpack.i.l.bf16 %v888_v27 }
  0xbd   :  { %773 = vmatpush1.bf16.msk.msra.mxu0 %vm772_vm12, %v771_v24  ;;  %797 = vmatpush1.bf16.msk.msra.mxu1 %vm772_vm12, %v795_v25  ;;  %v355_v33 = vsel %vm189_vm13, %v894_v30, %v895_v28  ;;  %v423_v24 = vld [vmem:[#allocation7 + $0x18] sm:$0xff]  ;;  %v425_v25 = vld [vmem:[#allocation7 + $0x28] sm:$0xff] }
  0xbe   :  { %v191_v34 = vsel %vm189_vm13, %v889_v32, %v890_v31  ;;  %v798_v29 = vpack.c.bf16 %v355_v33, %v1073_v7  ;;  %v903_v36 = vpop.permute.xlu1 %902 }
  0xbf   :  { %v774_v35 = vpack.c.bf16 %v191_v34, %v1075_v8  ;;  %v898_v37 = vpop.permute.xlu0 %897  ;;  %v905_v38 = vunpack.i.h.bf16 %v903_v36  ;;  %v904_v39 = vunpack.i.l.bf16 %v903_v36 }
  0xc0   :  { %v900_v40 = vunpack.i.h.bf16 %v898_v37  ;;  %v899_v41 = vunpack.i.l.bf16 %v898_v37  ;;  %800 = vmatprep.subr.msk.bf16.mxu1 %vm775_vm14, %v798_v29 }
  0xc1   :  { %776 = vmatprep.subr.msk.bf16.mxu0 %vm775_vm14, %v774_v35  ;;  %v212_v7 = vsel %vm210_vm15, %v904_v39, %v905_v38 }
  0xc2   :  { %v354_v42 = vsel %vm189_vm13, %v900_v40, %v894_v30  ;;  %v190_v44 = vsel %vm189_vm13, %v899_v41, %v889_v32  ;;  %v913_v47 = vpop.permute.xlu1 %912 }
  0xc3   :  { %v801_v8 = vpack.c.bf16 %v354_v42, %v1069_v5  ;;  %v777_v46 = vpack.c.bf16 %v190_v44, %v1071_v6  ;;  %v908_v48 = vpop.permute.xlu0 %907  ;;  %v915_v49 = vunpack.i.h.bf16 %v913_v47  ;;  %v914_v50 = vunpack.i.l.bf16 %v913_v47 }
  0xc4   :  { %v910_v51 = vunpack.i.h.bf16 %v908_v48  ;;  %v909_v52 = vunpack.i.l.bf16 %v908_v48 }
  0xc5   :  { %779 = vmatpush1.bf16.msk.msra.mxu0 %vm778_vm0, %v777_v46  ;;  %803 = vmatpush1.bf16.msk.msra.mxu1 %vm778_vm0, %v801_v8  ;;  %v375_v58 = vsel %vm210_vm15, %v914_v50, %v915_v49 }
  0xc6   :  { %v233_v53 = vsel %vm231_vm1, %v909_v52, %v910_v51  ;;  %v923_v56 = vpop.permute.xlu1 %922 }
  0xc7   :  { %v780_v55 = vpack.c.bf16 %v233_v53, %v212_v7  ;;  %v918_v57 = vpop.permute.xlu0 %917  ;;  %v925_v6 = vunpack.i.h.bf16 %v923_v56  ;;  %v924_v60 = vunpack.i.l.bf16 %v923_v56 }
  0xc8   :  { %v920_v59 = vunpack.i.h.bf16 %v918_v57  ;;  %v919_v5 = vunpack.i.l.bf16 %v918_v57 }
  0xc9   :  { %782 = vmatprep.subr.msk.bf16.mxu0 %vm1123_vm8, %v780_v55  ;;  %v211_v4 = vsel %vm210_vm15, %v924_v60, %v904_v39  ;;  %v374_v9 = vsel %vm210_vm15, %v925_v6, %v914_v50 }
  0xca   :  { %v395_v61 = vsel %vm231_vm1, %v919_v5, %v920_v59  ;;  %v247_v63 = vpop.permute.xlu1 %246 }
  0xcb   :  { %v804_v62 = vpack.c.bf16 %v395_v61, %v375_v58  ;;  %v928_v1 = vpop.permute.xlu0 %927 }
  0xcc   :  { %v930_v2 = vunpack.i.h.bf16 %v928_v1  ;;  %v929_v3 = vunpack.i.l.bf16 %v928_v1 }
  0xcd   :  { %806 = vmatprep.subr.msk.bf16.mxu1 %vm1123_vm8, %v804_v62 }
  0xce   :  { %v232_v10 = vsel %vm231_vm1, %v929_v3, %v909_v52  ;;  %v394_v11 = vsel %vm231_vm1, %v930_v2, %v919_v5  ;;  %v409_v14 = vpop.permute.xlu1 %408 }
  0xcf   :  { %v783_v12 = vpack.c.bf16 %v232_v10, %v211_v4  ;;  %v807_v13 = vpack.c.bf16 %v394_v11, %v374_v9  ;;  %v249_v17 = vpop.permute.xlu0 %248 }
  0xd0   :  { %v252_v18 = vsel %vm250_vm2, %v247_v63, %v249_v17 }
  0xd1   :  { %785 = vmatpush1.bf16.msk.msra.mxu0 %vm1133_vm9, %v783_v12  ;;  %809 = vmatpush1.bf16.msk.msra.mxu1 %vm1133_vm9, %v807_v13 }
  0xd2   :  { %748 = vmatprep.subr.msk.mxu0 %vm1115_vm6, %v252_v18  ;;  %v245_v45 = vpop.permute.xlu1 %244 }
  0xd3   :  { %v411_v19 = vpop.permute.xlu0 %410  ;;  %v251_v22 = vsel %vm250_vm2, %v245_v45, %v247_v63 }
  0xd4   :  { %v413_v23 = vsel %vm250_vm2, %v409_v14, %v411_v19 }
  0xd5   :  { %749 = vmatpush1.msk.msra.mxu0 %vm1160_vm11, %v251_v22  ;;  %760 = vmatprep.subr.msk.mxu1 %vm1115_vm6, %v413_v23 }
  0xd6   :  { %726 = vmatmul.mubr.msk.f32.vlgmr.msra.gmra.mrb[0].mxu0 %vm462_vm3, %v420_v21 }
  0xd7   :  { %v407_v54 = vpop.permute.xlu0 %406  ;;  %551 = vmatprep.mubr.f32.mxu0 %v1009_v0 }
  0xd8   :  { %v412_v20 = vsel %vm250_vm2, %v407_v54, %v409_v14 }
  0xd9   :  { %761 = vmatpush1.msk.msra.mxu1 %vm1160_vm11, %v412_v20 }
  0xda   :  { %732 = vmatmul.mubr.msk.f32.vlgmr.msra.gmra.mrb[0].mxu1 %vm462_vm3, %v420_v21  ;;  %727 = vmatmul.mubr.msk.f32.gmra.mrb[2].mxu0 %vm462_vm3, %v421_v15 }
  0xdb   :  { %652 = vmatprep.mubr.f32.mxu1 %v1009_v0  ;;  %557 = vmatprep.mubr.f32.mxu0 %v1009_v0 }
  0xde   :  { %733 = vmatmul.mubr.msk.f32.gmra.mrb[2].mxu1 %vm462_vm3, %v421_v15  ;;  %728 = vmatmul.mubr.msk.f32.gmra.mrb[4].mxu0 %vm462_vm3, %v422_v43 }
  0xdf   :  { %658 = vmatprep.mubr.f32.mxu1 %v1009_v0  ;;  %563 = vmatprep.mubr.f32.mxu0 %v1009_v0 }
  0xe2   :  { %734 = vmatmul.mubr.msk.f32.gmra.mrb[4].mxu1 %vm462_vm3, %v422_v43  ;;  %729 = vmatmul.mubr.msk.f32.gmra.mrb[6].mxu0 %vm462_vm3, %v423_v24 }
  0xe3   :  { %664 = vmatprep.mubr.f32.mxu1 %v1009_v0  ;;  %569 = vmatprep.mubr.f32.mxu0 %v1009_v0 }
  0xe6   :  { %735 = vmatmul.mubr.msk.f32.gmra.mrb[6].mxu1 %vm462_vm3, %v423_v24  ;;  %730 = vmatmul.mubr.msk.f32.gmra.mrb[8].mxu0 %vm462_vm3, %v424_v16 }
  0xe7   :  { %670 = vmatprep.mubr.f32.mxu1 %v1009_v0  ;;  %575 = vmatprep.mubr.f32.mxu0 %v1009_v0 }
  0xea   :  { %736 = vmatmul.mubr.msk.f32.gmra.mrb[8].mxu1 %vm462_vm3, %v424_v16  ;;  %731 = vmatmul.mubr.msk.f32.gmra.mrb[10].mxu0 %vm462_vm3, %v425_v25 }
  0xeb   :  { %676 = vmatprep.mubr.f32.mxu1 %v1009_v0 }
  0xee   :  { %737 = vmatmul.mubr.msk.f32.gmra.mrb[10].mxu1 %vm462_vm3, %v425_v25 }
 0x1a9   :  { %v547_v26 = vpop.f32.mrb[0].mxu0 }
 0x1aa   :  { %683 = vst [vmem:[#allocation9] sm:$0xff] %v547_v26  ;;  %v549_v27 = vpop.f32.mrb[1].mxu0 }
 0x1ab   :  { %684 = vst [vmem:[#allocation9 + $0x8] sm:$0xff] %v549_v27 }
 0x1ad   :  { %v648_v28 = vpop.f32.mrb[0].mxu1  ;;  %v553_v30 = vpop.f32.mrb[2].mxu0 }
 0x1ae   :  { %696 = vst [vmem:[#allocation9 + $0x60] sm:$0xff] %v648_v28  ;;  %v650_v31 = vpop.f32.mrb[1].mxu1  ;;  %685 = vst [vmem:[#allocation9 + $0x10] sm:$0xff] %v553_v30  ;;  %v555_v32 = vpop.f32.mrb[3].mxu0 }
 0x1af   :  { %697 = vst [vmem:[#allocation9 + $0x68] sm:$0xff] %v650_v31  ;;  %686 = vst [vmem:[#allocation9 + $0x18] sm:$0xff] %v555_v32 }
 0x1b1   :  { %v654_v33 = vpop.f32.mrb[2].mxu1  ;;  %v559_v34 = vpop.f32.mrb[4].mxu0 }
 0x1b2   :  { %698 = vst [vmem:[#allocation9 + $0x70] sm:$0xff] %v654_v33  ;;  %v656_v29 = vpop.f32.mrb[3].mxu1  ;;  %687 = vst [vmem:[#allocation9 + $0x20] sm:$0xff] %v559_v34  ;;  %v561_v0 = vpop.f32.mrb[5].mxu0 }
 0x1b3   :  { %699 = vst [vmem:[#allocation9 + $0x78] sm:$0xff] %v656_v29  ;;  %688 = vst [vmem:[#allocation9 + $0x28] sm:$0xff] %v561_v0 }
 0x1b5   :  { %v660_v35 = vpop.f32.mrb[4].mxu1  ;;  %v565_v36 = vpop.f32.mrb[6].mxu0 }
 0x1b6   :  { %700 = vst [vmem:[#allocation9 + $0x80] sm:$0xff] %v660_v35  ;;  %v662_v37 = vpop.f32.mrb[5].mxu1  ;;  %689 = vst [vmem:[#allocation9 + $0x30] sm:$0xff] %v565_v36  ;;  %v567_v38 = vpop.f32.mrb[7].mxu0 }
 0x1b7   :  { %701 = vst [vmem:[#allocation9 + $0x88] sm:$0xff] %v662_v37  ;;  %690 = vst [vmem:[#allocation9 + $0x38] sm:$0xff] %v567_v38 }
 0x1b9   :  { %v666_v39 = vpop.f32.mrb[6].mxu1  ;;  %v571_v40 = vpop.f32.mrb[8].mxu0 }
 0x1ba   :  { %702 = vst [vmem:[#allocation9 + $0x90] sm:$0xff] %v666_v39  ;;  %v668_v41 = vpop.f32.mrb[7].mxu1  ;;  %691 = vst [vmem:[#allocation9 + $0x40] sm:$0xff] %v571_v40  ;;  %v573_v42 = vpop.f32.mrb[9].mxu0 }
 0x1bb   :  { %703 = vst [vmem:[#allocation9 + $0x98] sm:$0xff] %v668_v41  ;;  %692 = vst [vmem:[#allocation9 + $0x48] sm:$0xff] %v573_v42 }
 0x1bd   :  { %v672_v44 = vpop.f32.mrb[8].mxu1  ;;  %v577_v7 = vpop.f32.mrb[10].mxu0 }
 0x1be   :  { %704 = vst [vmem:[#allocation9 + $0xa0] sm:$0xff] %v672_v44  ;;  %v674_v8 = vpop.f32.mrb[9].mxu1  ;;  %693 = vst [vmem:[#allocation9 + $0x50] sm:$0xff] %v577_v7  ;;  %v579_v46 = vpop.f32.mrb[11].mxu0 }
 0x1bf   :  { %705 = vst [vmem:[#allocation9 + $0xa8] sm:$0xff] %v674_v8  ;;  %694 = vst [vmem:[#allocation9 + $0x58] sm:$0xff] %v579_v46 }
 0x1c1   :  { %v678_v47 = vpop.f32.mrb[10].mxu1 }
 0x1c2   :  { %706 = vst [vmem:[#allocation9 + $0xb0] sm:$0xff] %v678_v47  ;;  %v680_v48 = vpop.f32.mrb[11].mxu1 }
 0x1c3   :  { %707 = vst [vmem:[#allocation9 + $0xb8] sm:$0xff] %v680_v48 }
 0x1c4   :  { %988 = shalt.err (!%p985_p6)
}
 0x1c5   :  { %s989_s18 = scalar_lea.hbm %s1256_s2, 3072 }
 0x1c6   :  { %p990_p7 = scmp.ne.s32.totalorder %s1256_s2, %s989_s18  ;;  %p993_p8 = scmp.lt.u32.totalorder %s989_s18, %s1256_s2 }
 0x1c8   :  { %p995_p9 = pnand %p993_p8, %p990_p7 }
 0x1ca   :  { %998 = shalt.err (!%p995_p9)
}
 0x1cb   :  { %s1020_s23 = smov 256  }
 0x1cc   :  { %719 = dma.vmem_to_hbm [thread:$0]  %s714_s14, 3072, %s1256_s2, [#allocation6], %s1020_s23, %s1020_s23, %s1010_s6  }
 0x1cd   :  { %1003 = dma.done.wait [#allocation6], 3072  }
 0x1ce   :  { %1004 = vsyncadd [#allocation6], 4294964224 }
 0x1cf   :  { %723 = vsyncpa [#allocation5], 1 }
 0x1d0   :  { %724 = vsyncpa [#allocation8], 1 }
 0x1d1   :  { %725 = vsyncpa [#allocation6], 1 }

</bundles_post_ra>
